<compile_context>
chip_gen: v7x
topology: tpu7x:2x2x1
jax: 0.10.0
libtpu: 0.0.40
codegen_flags: <defaults>
</compile_context>

<pallas_src>
import jax
import jax.numpy as jnp
from jax import lax
from jax.experimental import pallas as pl
from jax.experimental.pallas import tpu as pltpu

MAX_TOKEN_BLOCK = 512            # upper bound on one-hot-path rows per grid step
ONEHOT_BYTES_BUDGET = 8 << 20    # budget for the (TB, V) one-hot temporary
ONEHOT_MAX_VOCAB = 1024          # above this the MXU one-hot loses to a DMA gather
MXU_K_TILE = 256                 # pad V to this (MXU K tile on v6e/v7x)
DMA_ROWS_PER_STEP = 32           # rows gathered per grid step on the DMA path


# --------------------------------------------------------------------------
# Path 1: small vocab -> one-hot MXU matmul (table resident in VMEM).
# --------------------------------------------------------------------------
def _embed_onehot_kernel(tok_ref, emb_ref, out_ref):
    """tok_ref: VMEM (TB,1) int32; emb_ref: VMEM (Vp,D); out_ref: VMEM (TB,D)."""
    tb = tok_ref.shape[0]
    v = emb_ref.shape[0]
    vocab_ids = lax.broadcasted_iota(jnp.int32, (tb, v), 1)
    one_hot = (tok_ref[...] == vocab_ids).astype(emb_ref.dtype)       # (TB, Vp)
    precision = (lax.Precision.HIGHEST
                 if emb_ref.dtype == jnp.float32 else lax.Precision.DEFAULT)
    out_ref[...] = jnp.dot(
        one_hot, emb_ref[...],
        preferred_element_type=jnp.float32,
        precision=precision,
    ).astype(out_ref.dtype)


def _vmem_ceiling_bytes():
    try:
        cap = pltpu.get_tpu_info().vmem_capacity_bytes
    except Exception:
        cap = 64 << 20          # conservative (v7x per-TC) fallback
    return int(cap * 0.80)      # headroom for Mosaic internal scratch


def _choose_onehot_block(n_tokens, v_pad, d, itemsize, table_bytes, ceiling):
    # Bound the (TB, Vp) f32 one-hot temporary to ~8 MiB, then make sure the
    # whole working set (resident table + double-buffered out/token blocks +
    # one-hot) fits under the per-core VMEM ceiling.
    tb = (ONEHOT_BYTES_BUDGET // (v_pad * 4)) // 8 * 8
    tb = int(min(MAX_TOKEN_BLOCK, max(8, tb)))
    tb = min(tb, max(8, ((n_tokens + 7) // 8) * 8))

    def footprint(t):
        return (table_bytes                       # resident table (1 copy, untiled)
                + 2 * t * d * itemsize            # double-buffered output block
                + 2 * t * 128 * 4                 # double-buffered (lane-padded) token block
                + t * v_pad * 4)                  # one-hot temporary

    while tb > 8 and footprint(tb) > ceiling:
        tb -= 8
    return tb, footprint(tb)


def _embed_onehot(tokens_flat, embedding_weight, vmem_ceiling):
    n = tokens_flat.shape[0]
    v, d = embedding_weight.shape
    itemsize = jnp.dtype(embedding_weight.dtype).itemsize

    v_pad = ((v + MXU_K_TILE - 1) // MXU_K_TILE) * MXU_K_TILE
    table = embedding_weight
    if v_pad != v:
        table = jnp.pad(table, ((0, v_pad - v), (0, 0)))   # zero rows: no MXU remainder pass
    table_bytes = v_pad * d * itemsize

    tb, footprint = _choose_onehot_block(n, v_pad, d, itemsize, table_bytes, vmem_ceiling)
    g = (n + tb - 1) // tb
    n_pad = g * tb
    if n_pad != n:
        tokens_flat = jnp.pad(tokens_flat, (0, n_pad - n))   # pad with id 0
    tokens_col = tokens_flat.reshape(n_pad, 1)

    vmem_limit = int(min(vmem_ceiling, max(16 << 20, int(footprint * 1.25))))

    out_flat = pl.pallas_call(
        _embed_onehot_kernel,
        out_shape=jax.ShapeDtypeStruct((n_pad, d), embedding_weight.dtype),
        grid=(g,),
        in_specs=[
            pl.BlockSpec((tb, 1), lambda i: (i, 0)),
            # Full table, untiled -> one resident VMEM copy (no double buffer).
            pl.BlockSpec(memory_space=pltpu.MemorySpace.VMEM),
        ],
        out_specs=pl.BlockSpec((tb, d), lambda i: (i, 0)),
        compiler_params=pltpu.CompilerParams(
            dimension_semantics=("parallel",),
            vmem_limit_bytes=vmem_limit,
        ),
    )(tokens_col, table)
    return out_flat[:n]


# --------------------------------------------------------------------------
# Path 2: general vocab -> DMA gather (table stays in HBM).
# --------------------------------------------------------------------------
def _embed_dma_gather_kernel(tok_ref, emb_hbm, out_ref, sems):
    """tok_ref: SMEM (Np,) int32; emb_hbm: HBM (V,D); out_ref: VMEM (TB,D)."""
    i = pl.program_id(0)
    tb = out_ref.shape[0]
    base = i * tb
    copies = []
    # Static unroll: destination rows are static, source rows are dynamic ids.
    for r in range(tb):
        tok = tok_ref[base + r]
        cp = pltpu.make_async_copy(
            emb_hbm.at[pl.ds(tok, 1), :],
            out_ref.at[pl.ds(r, 1), :],
            sems.at[r],
        )
        cp.start()
        copies.append(cp)
    for cp in copies:
        cp.wait()


def _embed_dma_gather(tokens_flat, embedding_weight, vmem_ceiling):
    n = tokens_flat.shape[0]
    v, d = embedding_weight.shape
    itemsize = jnp.dtype(embedding_weight.dtype).itemsize

    tb = DMA_ROWS_PER_STEP
    g = (n + tb - 1) // tb
    n_pad = g * tb
    if n_pad != n:
        tokens_flat = jnp.pad(tokens_flat, (0, n_pad - n))   # pad with id 0 (in range)

    per_step = 2 * tb * d * itemsize   # double-buffered output block
    vmem_limit = int(min(vmem_ceiling, max(16 << 20, 2 * per_step)))

    out_flat = pl.pallas_call(
        _embed_dma_gather_kernel,
        out_shape=jax.ShapeDtypeStruct((n_pad, d), embedding_weight.dtype),
        grid_spec=pltpu.PrefetchScalarGridSpec(
            num_scalar_prefetch=1,                       # token ids -> SMEM
            grid=(g,),
            in_specs=[pl.BlockSpec(memory_space=pl.ANY)],  # table stays in HBM
            out_specs=pl.BlockSpec((tb, d), lambda i, tok: (i, 0)),
            scratch_shapes=[pltpu.SemaphoreType.DMA((tb,))],
        ),
        compiler_params=pltpu.CompilerParams(
            dimension_semantics=("arbitrary",),
            vmem_limit_bytes=vmem_limit,
        ),
    )(tokens_flat, embedding_weight)
    return out_flat[:n]


# --------------------------------------------------------------------------
# Forward wrapper (matches EmbeddingFunction.forward).
# --------------------------------------------------------------------------
@jax.jit
def embedding_forward(input_tokens, embedding_weight):
    """input_tokens: int (B, S); embedding_weight: float (V, D) -> (B, S, D)."""
    b, s = input_tokens.shape
    v, d = embedding_weight.shape
    n = b * s
    itemsize = jnp.dtype(embedding_weight.dtype).itemsize

    # Memory-safe handling of out-of-range ids (PyTorch would raise).
    tokens_flat = jnp.clip(input_tokens.reshape(n).astype(jnp.int32), 0, v - 1)

    vmem_ceiling = _vmem_ceiling_bytes()
    table_bytes = v * d * itemsize
    use_onehot = (v <= ONEHOT_MAX_VOCAB) and (table_bytes <= vmem_ceiling // 2)

    if use_onehot:
        out_flat = _embed_onehot(tokens_flat, embedding_weight, vmem_ceiling)
    else:
        out_flat = _embed_dma_gather(tokens_flat, embedding_weight, vmem_ceiling)
    return out_flat.reshape(b, s, d)


if __name__ == "__main__":
    key = jax.random.PRNGKey(0)
    k_emb, k_tok, k_emb2, k_tok2 = jax.random.split(key, 4)

    # --- small-vocab case (exercises the one-hot MXU path) ---
    vocab_size, embedding_dim = 64, 128
    batch, seq = 2, 8
    embedding_weight = jax.random.normal(
        k_emb, (vocab_size, embedding_dim), dtype=jnp.float32)   # nn.Embedding init: N(0,1)
    input_tokens = jax.random.randint(
        k_tok, (batch, seq), minval=0, maxval=vocab_size, dtype=jnp.int32)

    out = jax.block_until_ready(embedding_forward(input_tokens, embedding_weight))
    ref = jnp.take(embedding_weight, input_tokens, axis=0)
    assert out.shape == (batch, seq, embedding_dim)
    assert jnp.allclose(out, ref, rtol=1e-6, atol=1e-6), "one-hot path mismatch"

    # --- larger-vocab case (exercises the DMA-gather path) ---
    vocab2, dim2 = 2048, 256
    batch2, seq2 = 2, 40
    weight2 = jax.random.normal(k_emb2, (vocab2, dim2), dtype=jnp.float32)
    tokens2 = jax.random.randint(k_tok2, (batch2, seq2), 0, vocab2, dtype=jnp.int32)

    out2 = jax.block_until_ready(embedding_forward(tokens2, weight2))
    ref2 = jnp.take(weight2, tokens2, axis=0)
    assert out2.shape == (batch2, seq2, dim2)
    assert jnp.array_equal(out2, ref2), "DMA-gather path mismatch"

    print("KERNEL_OK")
</pallas_src>

<mosaic_0001>
module attributes {stable_mosaic.version = 11 : i64} {
  func.func @_embed_onehot_kernel(%arg0: i32, %arg1: memref<16x1xi32, #tpu.memory_space<vmem>>, %arg2: memref<256x128xf32, #tpu.memory_space<vmem>>, %arg3: memref<16x128xf32, #tpu.memory_space<vmem>>) attributes {dimension_semantics = [#tpu.dimension_semantics<parallel>], iteration_bounds = array<i64: 1>, scalar_prefetch = 0 : i64, scratch_operands = 0 : i64, tpu.core_type = #tpu.core_type<tc>, window_params = [{transform_indices = @transform_0, window_bounds = array<i64: 16, 1>}, {pipeline_mode = #tpu.pipeline_mode<synchronous>, transform_indices = @transform_1, window_bounds = array<i64: 256, 128>}, {transform_indices = @transform_2, window_bounds = array<i64: 16, 128>}]} {
    %0 = tpu.iota {dimensions = array<i32: 1>} : vector<16x256xi32>
    %c0 = arith.constant 0 : index
    %c0_0 = arith.constant 0 : index
    %1 = vector.load %arg1[%c0, %c0_0] : memref<16x1xi32, #tpu.memory_space<vmem>>, vector<16x1xi32>
    %2 = vector.broadcast %1 : vector<16x1xi32> to vector<16x256xi32>
    %3 = arith.cmpi eq, %2, %0 : vector<16x256xi32>
    %4 = arith.extui %3 : vector<16x256xi1> to vector<16x256xi32>
    %5 = arith.sitofp %4 : vector<16x256xi32> to vector<16x256xf32>
    %c0_1 = arith.constant 0 : index
    %c0_2 = arith.constant 0 : index
    %6 = vector.load %arg2[%c0_1, %c0_2] : memref<256x128xf32, #tpu.memory_space<vmem>>, vector<256x128xf32>
    %cst = arith.constant dense<0.000000e+00> : vector<16x128xf32>
    %7 = tpu.matmul %5, %6, %cst {dimension_numbers = #tpu.dot_dimension_numbers<[1], [0], [0], [1], [0, 0, 1, 1], [], []>, precision = #tpu.contract_precision<fp32>} : vector<16x256xf32>, vector<256x128xf32>, vector<16x128xf32> -> vector<16x128xf32>
    %c0_3 = arith.constant 0 : index
    %c0_4 = arith.constant 0 : index
    %8 = vector.load %arg3[%c0_3, %c0_4] : memref<16x128xf32, #tpu.memory_space<vmem>>, vector<16x128xf32>
    tpu.vector_store %arg3[%c0_3, %c0_4], %7 {strides = array<i32>} : memref<16x128xf32, #tpu.memory_space<vmem>>, vector<16x128xf32>,
    return
  }
  func.func @transform_0(%arg0: i32) -> (i32, i32) {
    %c0_i32 = arith.constant 0 : i32
    %c0_i32_0 = arith.constant 0 : i32
    return %arg0, %c0_i32 : i32, i32
  }
  func.func @transform_1(%arg0: i32) -> (i32, i32) {
    %c0_i32 = arith.constant 0 : i32
    %c0_i32_0 = arith.constant 0 : i32
    %c0_i32_1 = arith.constant 0 : i32
    return %c0_i32, %c0_i32_0 : i32, i32
  }
  func.func @transform_2(%arg0: i32) -> (i32, i32) {
    %c0_i32 = arith.constant 0 : i32
    %c0_i32_0 = arith.constant 0 : i32
    return %arg0, %c0_i32 : i32, i32
  }
}

</mosaic_0001>

<bundles_post_ra>
// kernel: embedding_forward.1
= control target key start
LH: loop header
LB: loop body
LE: loop exit
PB: predicated region body
PF: predicated region fallthrough
CT: control target
= control target key end

     0   :  { %v1470_v2 = vmov 0   ;;  %s2340_s0 = inlined_call_operand.vmem [shape: s32[16,1], index: 0, kind: input, shape index: {}]   ;;  %s2341_s1 = inlined_call_operand.vmem [shape: f32[256,128], index: 1, kind: input, shape index: {}]   ;;  %s2342_s2 = inlined_call_operand.hbm [shape: f32[16,128], index: 2, kind: output, shape index: {}]  }
   0x1   :  { %v15_v0 = vld [vmem:[%s2340_s0] sm:$0xff]  ;;  %1445 = vset.pattern.permute.xlu0 %v1470_v2  ;;  %v1502_v3 = vld [vmem:[%s2341_s1 + $0x88] sm:$0xff]  ;;  %v1521_v10 = vld [vmem:[%s2341_s1 + $0x90] sm:$0xff] }
   0x2   :  { %v1497_v1 = vld [vmem:[%s2341_s1 + $0x80] sm:$0xff]  ;;  %v1513_v6 = vld [vmem:[%s2341_s1 + $0x8] sm:$0xff]  ;;  %18 = vperm.xlu0 %1445, %v15_v0   ;;  %v119_v7 = vand.u32 4294901760, %v1502_v3  ;;  %v1526_v11 = vld [vmem:[%s2341_s1 + $0x98] sm:$0xff]  ;;  %v122_v15 = vand.u32 4294901760, %v1521_v10 }
   0x3   :  { %v116_v4 = vand.u32 4294901760, %v1497_v1  ;;  %v1508_v5 = vld [vmem:[%s2341_s1] sm:$0xff]  ;;  %v71_v9 = vand.u32 4294901760, %v1513_v6  ;;  %v1531_v12 = vld [vmem:[%s2341_s1 + $0x10] sm:$0xff]  ;;  %v16_v13 = vld [vmem:[%s2340_s0 + $0x8] sm:$0xff]  ;;  %v125_v16 = vand.u32 4294901760, %v1526_v11 }
   0x4   :  { %v68_v8 = vand.u32 4294901760, %v1508_v5  ;;  %v1544_v17 = vld [vmem:[%s2341_s1 + $0x18] sm:$0xff]  ;;  %v74_v18 = vand.u32 4294901760, %v1531_v12  ;;  %v1548_v19 = vsub.f32 %v1502_v3, %v119_v7  ;;  %v1565_v24 = vsub.f32 %v1521_v10, %v122_v15  ;;  %v1604_v39 = vld [vmem:[%s2341_s1 + $0xa0] sm:$0xff]  ;;  %v1618_v44 = vld [vmem:[%s2341_s1 + $0xa8] sm:$0xff] }
   0x5   :  { %v1537_v14 = vsub.f32 %v1497_v1, %v116_v4  ;;  %v1558_v21 = vsub.f32 %v1513_v6, %v71_v9  ;;  %v77_v22 = vand.u32 4294901760, %v1544_v17  ;;  %v1570_v25 = vsub.f32 %v1526_v11, %v125_v16  ;;  %v1626_v49 = vld [vmem:[%s2341_s1 + $0x20] sm:$0xff]  ;;  %v1632_v54 = vld [vmem:[%s2341_s1 + $0x28] sm:$0xff]  ;;  %v1638_v59 = vld [vmem:[%s2341_s1 + $0xb0] sm:$0xff] }
   0x6   :  { %v1553_v20 = vsub.f32 %v1508_v5, %v68_v8  ;;  %v1575_v26 = vsub.f32 %v1531_v12, %v74_v18  ;;  %21 = vperm.xlu0 %1445, %v16_v13   ;;  %v2362_v27 = vand.u32 4294901760, %v1548_v19  ;;  %v2356_v32 = vand.u32 4294901760, %v1565_v24  ;;  %v1643_v60 = vld [vmem:[%s2341_s1 + $0xb8] sm:$0xff] }
   0x7   :  { %v2363_v23 = vand.u32 4294901760, %v1537_v14  ;;  %v2357_v29 = vand.u32 4294901760, %v1558_v21  ;;  %v1583_v30 = vsub.f32 %v1544_v17, %v77_v22  ;;  %v2355_v33 = vand.u32 4294901760, %v1570_v25 }
   0x8   :  { %v2361_v28 = vand.u32 4294901760, %v1553_v20  ;;  %v2354_v34 = vand.u32 4294901760, %v1575_v26  ;;  %v317_v35 = vsub.f32 %v1548_v19, %v2362_v27  ;;  %v324_v41 = vsub.f32 %v1565_v24, %v2356_v32 }
   0x9   :  { %v310_v31 = vsub.f32 %v1537_v14, %v2363_v23  ;;  %v205_v37 = vsub.f32 %v1558_v21, %v2357_v29  ;;  %v2351_v38 = vand.u32 4294901760, %v1583_v30  ;;  %v331_v42 = vsub.f32 %v1570_v25, %v2355_v33 }
   0xa   :  { %v198_v36 = vsub.f32 %v1553_v20, %v2361_v28  ;;  %v212_v43 = vsub.f32 %v1575_v26, %v2354_v34  ;;  %v318_v45 = vand.u32 4294901760, %v317_v35  ;;  %v325_v50 = vand.u32 4294901760, %v324_v41 }
   0xb   :  { %v311_v40 = vand.u32 4294901760, %v310_v31  ;;  %v206_v47 = vand.u32 4294901760, %v205_v37  ;;  %v219_v48 = vsub.f32 %v1583_v30, %v2351_v38  ;;  %v332_v51 = vand.u32 4294901760, %v331_v42 }
   0xc   :  { %v199_v46 = vand.u32 4294901760, %v198_v36  ;;  %v213_v52 = vand.u32 4294901760, %v212_v43  ;;  %v128_v53 = vand.u32 4294901760, %v1604_v39  ;;  %v131_v58 = vand.u32 4294901760, %v1618_v44 }
   0xd   :  { %v1279_v55 = vpack.c.bf16 %v318_v45, %v311_v40  ;;  %v220_v57 = vand.u32 4294901760, %v219_v48 }
   0xe   :  { %v1281_v56 = vpack.c.bf16 %v206_v47, %v199_v46 }
   0xf   :  { %7 = vsyncpa [#allocation3], 0  ;;  %v1283_v61 = vpack.c.bf16 %v332_v51, %v325_v50  ;;  %v1648_v62 = vsub.f32 %v1604_v39, %v128_v53  ;;  %v1650_v63 = vpack.c.bf16 %v119_v7, %v116_v4  ;;  %v80_v0 = vand.u32 4294901760, %v1626_v49  ;;  %v1656_v1 = vld [vmem:[%s2341_s1 + $0x30] sm:$0xff]  ;;  %1280 = vmatprep.subr.bf16.mxu1 %v1279_v55  ;;  %v1682_v5 = vld [vmem:[%s2341_s1 + $0x38] sm:$0xff] }
  0x10   :  { %v1285_v2 = vpack.c.bf16 %v220_v57, %v213_v52  ;;  %v1661_v3 = vsub.f32 %v1618_v44, %v131_v58  ;;  %v83_v13 = vand.u32 4294901760, %v1632_v54  ;;  %v1668_v4 = vpack.c.bf16 %v71_v9, %v68_v8  ;;  %1282 = vmatpush3.bf16.msra.mxu1 %v1281_v56  ;;  %v1740_v56 = vld [vmem:[%s2341_s1 + $0xc0] sm:$0xff]  ;;  %v1745_v57 = vld [vmem:[%s2341_s1 + $0xc8] sm:$0xff] }
  0x11   :  { %v2348_v7 = vand.u32 4294901760, %v1648_v62  ;;  %1248 = vmatprep.subr.bf16.mxu0 %v1650_v63  ;;  %v1675_v31 = vsub.f32 %v1626_v49, %v80_v0  ;;  %v134_v35 = vand.u32 4294901760, %v1638_v59  ;;  %v137_v36 = vand.u32 4294901760, %v1643_v60  ;;  %1284 = vmatprep.subr.bf16.mxu1 %v1283_v61  ;;  %v1826_v49 = vld [vmem:[%s2341_s1 + $0x50] sm:$0xff]  ;;  %v1909_v23 = vld [vmem:[%s2341_s1 + $0x60] sm:$0xff] }
  0x12   :  { %v2345_v6 = vand.u32 4294901760, %v1661_v3  ;;  %v1688_v8 = vsub.f32 %v1632_v54, %v83_v13  ;;  %1250 = vmatpush3.bf16.msra.mxu0 %v1668_v4  ;;  %v1695_v9 = vpack.c.bf16 %v125_v16, %v122_v15  ;;  %v86_v37 = vand.u32 4294901760, %v1656_v1  ;;  %v1831_v54 = vld [vmem:[%s2341_s1 + $0x58] sm:$0xff] }
  0x13   :  { %v338_v40 = vsub.f32 %v1648_v62, %v2348_v7  ;;  %v2344_v41 = vand.u32 4294901760, %v1675_v31  ;;  %v1705_v42 = vsub.f32 %v1638_v59, %v134_v35  ;;  %v1710_v10 = vsub.f32 %v1643_v60, %v137_v36 }
  0x14   :  { %v345_v11 = vsub.f32 %v1661_v3, %v2345_v6  ;;  %v2343_v15 = vand.u32 4294901760, %v1688_v8  ;;  %1252 = vmatprep.subr.bf16.mxu0 %v1695_v9  ;;  %v89_v16 = vand.u32 4294901760, %v1682_v5  ;;  %v1721_v43 = vsub.f32 %v1656_v1, %v86_v37  ;;  %1286 = vmatpush3.bf16.msra.mxu1 %v1285_v2 }
  0x15   :  { %v339_v45 = vand.u32 4294901760, %v338_v40  ;;  %v226_v46 = vsub.f32 %v1675_v31, %v2344_v41  ;;  %v2346_v47 = vand.u32 4294901760, %v1705_v42  ;;  %v2347_v48 = vand.u32 4294901760, %v1710_v10 }
  0x16   :  { %v346_v50 = vand.u32 4294901760, %v345_v11  ;;  %v233_v51 = vsub.f32 %v1688_v8, %v2343_v15  ;;  %v2349_v52 = vand.u32 4294901760, %v1721_v43  ;;  %v1735_v55 = vsub.f32 %v1682_v5, %v89_v16 }
  0x17   :  { %v227_v61 = vand.u32 4294901760, %v226_v46  ;;  %v352_v2 = vsub.f32 %v1705_v42, %v2346_v47  ;;  %v359_v40 = vsub.f32 %v1710_v10, %v2347_v48  ;;  %v1757_v11 = vpack.c.bf16 %v77_v22, %v74_v18  ;;  %v1766_v47 = vld [vmem:[%s2341_s1 + $0x40] sm:$0xff]  ;;  %v1774_v18 = vld [vmem:[%s2341_s1 + $0x48] sm:$0xff]  ;;  %v1779_v22 = vld [vmem:[%s2341_s1 + $0xd0] sm:$0xff] }
  0x18   :  { %v1287_v15 = vpack.c.bf16 %v346_v50, %v339_v45  ;;  %v234_v41 = vand.u32 4294901760, %v233_v51  ;;  %v240_v46 = vsub.f32 %v1721_v43, %v2349_v52  ;;  %v2350_v6 = vand.u32 4294901760, %v1735_v55 }
  0x19   :  { %v353_v48 = vand.u32 4294901760, %v352_v2  ;;  %v360_v7 = vand.u32 4294901760, %v359_v40  ;;  %1254 = vmatpush3.bf16.msra.mxu0 %v1757_v11  ;;  %v140_v12 = vand.u32 4294901760, %v1740_v56  ;;  %v143_v17 = vand.u32 4294901760, %v1745_v57  ;;  %v1793_v40 = vld [vmem:[%s2341_s1 + $0xd8] sm:$0xff] }
  0x1a   :  { %1288 = vmatprep.subr.bf16.mxu1 %v1287_v15  ;;  %v1289_v45 = vpack.c.bf16 %v234_v41, %v227_v61  ;;  %v241_v50 = vand.u32 4294901760, %v240_v46  ;;  %v247_v51 = vsub.f32 %v1735_v55, %v2350_v6  ;;  %v1788_v2 = vpack.c.bf16 %v131_v58, %v128_v53 }
  0x1b   :  { %v1291_v52 = vpack.c.bf16 %v360_v7, %v353_v48  ;;  %v1798_v41 = vsub.f32 %v1740_v56, %v140_v12  ;;  %v1803_v15 = vsub.f32 %v1745_v57, %v143_v17  ;;  %v92_v39 = vand.u32 4294901760, %v1766_v47 }
  0x1c   :  { %1290 = vmatpush3.bf16.msra.mxu1 %v1289_v45  ;;  %v248_v44 = vand.u32 4294901760, %v247_v51  ;;  %1256 = vmatprep.subr.bf16.mxu0 %v1788_v2  ;;  %v95_v53 = vand.u32 4294901760, %v1774_v18  ;;  %v1812_v58 = vpack.c.bf16 %v83_v13, %v80_v0  ;;  %v146_v7 = vand.u32 4294901760, %v1779_v22 }
  0x1d   :  { %1292 = vmatprep.subr.bf16.mxu1 %v1291_v52  ;;  %v2352_v48 = vand.u32 4294901760, %v1798_v41  ;;  %v2353_v61 = vand.u32 4294901760, %v1803_v15  ;;  %v1820_v46 = vsub.f32 %v1766_v47, %v92_v39  ;;  %v149_v45 = vand.u32 4294901760, %v1793_v40  ;;  %v50_v47 = vld [vmem:[%s2341_s1 + $0x78] sm:$0xff] }
  0x1e   :  { %v1293_v0 = vpack.c.bf16 %v248_v44, %v241_v50  ;;  %v1836_v13 = vsub.f32 %v1774_v18, %v95_v53  ;;  %1258 = vmatpush3.bf16.msra.mxu0 %v1812_v58  ;;  %v1842_v52 = vsub.f32 %v1779_v22, %v146_v7  ;;  %v1848_v51 = vpack.c.bf16 %v137_v36, %v134_v35 }
  0x1f   :  { %v366_v50 = vsub.f32 %v1798_v41, %v2352_v48  ;;  %v373_v44 = vsub.f32 %v1803_v15, %v2353_v61  ;;  %v2360_v6 = vand.u32 4294901760, %v1820_v46  ;;  %v1860_v38 = vsub.f32 %v1793_v40, %v149_v45 }
  0x20   :  { %1294 = vmatpush3.bf16.msra.mxu1 %v1293_v0  ;;  %v2358_v59 = vand.u32 4294901760, %v1836_v13  ;;  %v2359_v60 = vand.u32 4294901760, %v1842_v52  ;;  %1260 = vmatprep.subr.bf16.mxu0 %v1848_v51  ;;  %v2365_v35 = vand.u32 4294901760, %v1826_v49  ;;  %v2364_v36 = vand.u32 4294901760, %v1831_v54 }
  0x21   :  { %v367_v48 = vand.u32 4294901760, %v366_v50  ;;  %v374_v61 = vand.u32 4294901760, %v373_v44  ;;  %v254_v34 = vsub.f32 %v1820_v46, %v2360_v6  ;;  %v2366_v33 = vand.u32 4294901760, %v1860_v38  ;;  %v1890_v44 = vld [vmem:[%s2341_s1 + $0xe0] sm:$0xff] }
  0x22   :  { %v261_v0 = vsub.f32 %v1836_v13, %v2358_v59  ;;  %v380_v32 = vsub.f32 %v1842_v52, %v2359_v60  ;;  %v1880_v29 = vsub.f32 %v1826_v49, %v2365_v35  ;;  %v1885_v50 = vsub.f32 %v1831_v54, %v2364_v36  ;;  %v1895_v59 = vld [vmem:[%s2341_s1 + $0xe8] sm:$0xff] }
  0x23   :  { %v1295_v60 = vpack.c.bf16 %v374_v61, %v367_v48  ;;  %v255_v6 = vand.u32 4294901760, %v254_v34  ;;  %v387_v28 = vsub.f32 %v1860_v38, %v2366_v33  ;;  %v1904_v27 = vpack.c.bf16 %v89_v16, %v86_v37  ;;  %v1916_v61 = vld [vmem:[%s2341_s1 + $0x68] sm:$0xff]  ;;  %v65_v33 = vld [vmem:[%s2341_s1 + $0xf0] sm:$0xff] }
  0x24   :  { %v262_v36 = vand.u32 4294901760, %v261_v0  ;;  %v381_v35 = vand.u32 4294901760, %v380_v32  ;;  %v2368_v48 = vand.u32 4294901760, %v1880_v29  ;;  %v2367_v34 = vand.u32 4294901760, %v1885_v50 }
  0x25   :  { %2389 = vst [vmem:[#allocation5_spill] sm:$0xff] %v1904_v27  ;;  %1296 = vmatprep.subr.bf16.mxu1 %v1295_v60  ;;  %v388_v1 = vand.u32 4294901760, %v387_v28  ;;  %1262 = vmatpush3.bf16.msra.mxu0 %v1904_v27  ;;  %v152_v5 = vand.u32 4294901760, %v1890_v44  ;;  %v155_v37 = vand.u32 4294901760, %v1895_v59  ;;  %v1925_v32 = vpack.c.bf16 %v143_v17, %v140_v12  ;;  %v66_v17 = vld [vmem:[%s2341_s1 + $0xf8] sm:$0xff] }
  0x26   :  { %v1297_v16 = vpack.c.bf16 %v262_v36, %v255_v6  ;;  %v268_v0 = vsub.f32 %v1880_v29, %v2368_v48  ;;  %v275_v28 = vsub.f32 %v1885_v50, %v2367_v34  ;;  %v104_v60 = vand.u32 4294901760, %v1909_v23 }
  0x27   :  { %2390 = vst [vmem:[#allocation6_spill] sm:$0xff] %v1925_v32  ;;  %v1299_v56 = vpack.c.bf16 %v388_v1, %v381_v35  ;;  %v1938_v57 = vsub.f32 %v1890_v44, %v152_v5  ;;  %v1941_v6 = vsub.f32 %v1895_v59, %v155_v37  ;;  %1264 = vmatprep.subr.bf16.mxu0 %v1925_v32  ;;  %v107_v12 = vand.u32 4294901760, %v1916_v61 }
  0x28   :  { %1298 = vmatpush3.bf16.msra.mxu1 %v1297_v16  ;;  %v269_v36 = vand.u32 4294901760, %v268_v0  ;;  %v276_v34 = vand.u32 4294901760, %v275_v28  ;;  %v1949_v48 = vsub.f32 %v1909_v23, %v104_v60  ;;  %v1955_v59 = vpack.c.bf16 %v95_v53, %v92_v39  ;;  %v49_v23 = vld [vmem:[%s2341_s1 + $0x70] sm:$0xff]  ;;  %s1473_s1 = smov [#allocation2]  }
  0x29   :  { %1300 = vmatprep.subr.bf16.mxu1 %v1299_v56  ;;  %v2369_v35 = vand.u32 4294901760, %v1938_v57  ;;  %v2370_v44 = vand.u32 4294901760, %v1941_v6  ;;  %v1960_v1 = vsub.f32 %v1916_v61, %v107_v12  ;;  %v158_v16 = vand.u32 4294901760, %v65_v33  ;;  %s992_s19 = sshll.u32 %s1473_s1, 4  ;;  %s993_s19 = int_to_ptr.vmem [resolvable:$true] %s992_s19 }
  0x2a   :  { %2391 = vst [vmem:[#allocation7_spill] sm:$0xff] %v1955_v59  ;;  %v1301_v18 = vpack.c.bf16 %v276_v34, %v269_v36  ;;  %v2375_v39 = vand.u32 4294901760, %v1949_v48  ;;  %1266 = vmatpush3.bf16.msra.mxu0 %v1955_v59  ;;  %v161_v53 = vand.u32 4294901760, %v66_v17  ;;  %v1974_v61 = vpack.c.bf16 %v149_v45, %v146_v7  ;;  %s1446_s20 = scalar_lea.vmem %s993_s19, 256  ;;  %p1451_p1 = scmp.lt.s32.totalorder %s993_s19, %s993_s19 }
  0x2b   :  { %v394_v0 = vsub.f32 %v1938_v57, %v2369_v35  ;;  %v401_v28 = vsub.f32 %v1941_v6, %v2370_v44  ;;  %v2380_v34 = vand.u32 4294901760, %v1960_v1  ;;  %v1983_v56 = vsub.f32 %v65_v33, %v158_v16  ;;  %p1447_p0 = scmp.ne.s32.totalorder %s993_s19, %s1446_s20  ;;  %p1452_p2 = scmp.lt.s32.totalorder %s1446_s20, %s1446_s20 }
  0x2c   :  { %2392 = vst [vmem:[#allocation8_spill] sm:$0xff] %v1974_v61  ;;  %1302 = vmatpush3.bf16.msra.mxu1 %v1301_v18  ;;  %v282_v22 = vsub.f32 %v1949_v48, %v2375_v39  ;;  %v1988_v40 = vsub.f32 %v66_v17, %v161_v53  ;;  %1268 = vmatprep.subr.bf16.mxu0 %v1974_v61  ;;  %v110_v7 = vand.u32 4294901760, %v49_v23  ;;  %v113_v45 = vand.u32 4294901760, %v50_v47 }
  0x2d   :  { %v395_v36 = vand.u32 4294901760, %v394_v0  ;;  %v402_v35 = vand.u32 4294901760, %v401_v28  ;;  %v289_v44 = vsub.f32 %v1960_v1, %v2380_v34  ;;  %v2382_v33 = vand.u32 4294901760, %v1983_v56  ;;  %p1453_p3 = por %p1452_p2, %p1451_p1 }
  0x2e   :  { %v283_v59 = vand.u32 4294901760, %v282_v22  ;;  %v2381_v18 = vand.u32 4294901760, %v1988_v40  ;;  %v1996_v32 = vsub.f32 %v49_v23, %v110_v7  ;;  %v1998_v39 = vsub.f32 %v50_v47, %v113_v45 }
  0x2f   :  { %v1303_v17 = vpack.c.bf16 %v402_v35, %v395_v36  ;;  %v290_v27 = vand.u32 4294901760, %v289_v44  ;;  %v408_v0 = vsub.f32 %v1983_v56, %v2382_v33  ;;  %v2393_v28 = vand.u32 4294901760, %v1826_v49  ;;  %p1454_p4 = pnand %p1453_p3, %p1447_p0 }
  0x30   :  { %v2394_v61 = vand.u32 4294901760, %v1831_v54  ;;  %v415_v22 = vsub.f32 %v1988_v40, %v2381_v18  ;;  %v295_v23 = vand.u32 4294901760, %v1996_v32  ;;  %v302_v47 = vand.u32 4294901760, %v1998_v39 }
  0x31   :  { %1304 = vmatprep.subr.bf16.mxu1 %v1303_v17  ;;  %v1305_v35 = vpack.c.bf16 %v290_v27, %v283_v59  ;;  %v409_v44 = vand.u32 4294901760, %v408_v0  ;;  %v2015_v36 = vpack.c.bf16 %v155_v37, %v152_v5  ;;  %v2022_v18 = vpack.c.bf16 %v161_v53, %v158_v16 }
  0x32   :  { %v2007_v34 = vpack.c.bf16 %v2394_v61, %v2393_v28  ;;  %v416_v49 = vand.u32 4294901760, %v415_v22  ;;  %v296_v54 = vsub.f32 %v1996_v32, %v295_v23  ;;  %v303_v61 = vsub.f32 %v1998_v39, %v302_v47 }
  0x33   :  { %1306 = vmatpush3.bf16.msra.mxu1 %v1305_v35  ;;  %v2020_v28 = vpack.c.bf16 %v107_v12, %v104_v60  ;;  %v2024_v33 = vpack.c.bf16 %v113_v45, %v110_v7  ;;  %v1311_v5 = vpack.c.bf16 %v1548_v19, %v1537_v14  ;;  %v2400_v35 = vand.u32 4294901760, %v1570_v25 }
  0x34   :  { %1270 = vmatpush3.bf16.msra.mxu0 %v2007_v34  ;;  %v1307_v27 = vpack.c.bf16 %v416_v49, %v409_v44  ;;  %v297_v59 = vand.u32 4294901760, %v296_v54  ;;  %v304_v17 = vand.u32 4294901760, %v303_v61  ;;  %v2397_v54 = vand.u32 4294901760, %v1553_v20 }
  0x35   :  { %1272 = vmatprep.subr.bf16.mxu0 %v2015_v36  ;;  %v2398_v61 = vand.u32 4294901760, %v1558_v21 }
  0x36   :  { %1308 = vmatprep.subr.bf16.mxu1 %v1307_v27  ;;  %v1309_v16 = vpack.c.bf16 %v304_v17, %v297_v59  ;;  %v2395_v17 = vand.u32 4294901760, %v1537_v14  ;;  %v2399_v27 = vand.u32 4294901760, %v1565_v24  ;;  %v2401_v59 = vand.u32 4294901760, %v1575_v26 }
  0x37   :  { %v2072_v44 = vpack.c.bf16 %v2398_v61, %v2397_v54  ;;  %v2402_v14 = vand.u32 4294901760, %v1583_v30  ;;  %v2408_v54 = vand.u32 4294901760, %v1688_v8 }
  0x38   :  { %1274 = vmatpush3.bf16.msra.mxu0 %v2020_v28  ;;  %1310 = vmatpush3.bf16.msra.mxu1 %v1309_v16  ;;  %v2396_v16 = vand.u32 4294901760, %v1548_v19  ;;  %v2078_v22 = vpack.c.bf16 %v2400_v35, %v2399_v27  ;;  %v2410_v35 = vand.u32 4294901760, %v1705_v42  ;;  %v2411_v27 = vand.u32 4294901760, %v1710_v10 }
  0x39   :  { %1276 = vmatprep.subr.bf16.mxu0 %v2022_v18  ;;  %1344 = vmatprep.subr.bf16.mxu1 %v1650_v63  ;;  %v2084_v19 = vpack.c.bf16 %v2402_v14, %v2401_v59  ;;  %v2413_v59 = vand.u32 4294901760, %v1721_v43  ;;  %v2414_v14 = vand.u32 4294901760, %v1735_v55 }
  0x3a   :  { %v2066_v49 = vpack.c.bf16 %v2396_v16, %v2395_v17  ;;  %v2404_v17 = vand.u32 4294901760, %v1648_v62  ;;  %v2405_v16 = vand.u32 4294901760, %v1661_v3  ;;  %v2102_v7 = vpack.c.bf16 %v2411_v27, %v2410_v35 }
  0x3b   :  { %2403 = vst [vmem:[#allocation9_spill] sm:$0xff] %v2084_v19  ;;  %v2108_v53 = vpack.c.bf16 %v2414_v14, %v2413_v59  ;;  %v2422_v35 = vand.u32 4294901760, %v1842_v52  ;;  %v2423_v27 = vand.u32 4294901760, %v1860_v38  ;;  %v2425_v59 = vand.u32 4294901760, %v1880_v29 }
  0x3c   :  { %1278 = vmatpush3.bf16.msra.mxu0 %v2024_v33  ;;  %v2090_v45 = vpack.c.bf16 %v2405_v16, %v2404_v17  ;;  %2412 = vst [vmem:[#allocation12_spill] sm:$0xff] %v2102_v7  ;;  %v2416_v17 = vand.u32 4294901760, %v1798_v41  ;;  %v2417_v16 = vand.u32 4294901760, %v1803_v15  ;;  %v2426_v14 = vand.u32 4294901760, %v1885_v50 }
  0x3d   :  { %1312 = vmatprep.subr.bf16.mxu0 %v1311_v5  ;;  %v2407_v5 = vand.u32 4294901760, %v1675_v31  ;;  %2415 = vst [vmem:[#allocation13_spill] sm:$0xff] %v2108_v53  ;;  %v2126_v0 = vpack.c.bf16 %v2423_v27, %v2422_v35  ;;  %v2434_v35 = vand.u32 4294901760, %v1983_v56  ;;  %v2435_v27 = vand.u32 4294901760, %v1988_v40 }
  0x3e   :  { %2406 = vst [vmem:[#allocation10_spill] sm:$0xff] %v2090_v45  ;;  %v2114_v12 = vpack.c.bf16 %v2417_v16, %v2416_v17  ;;  %v2132_v37 = vpack.c.bf16 %v2426_v14, %v2425_v59  ;;  %v2428_v17 = vand.u32 4294901760, %v1938_v57  ;;  %v2429_v16 = vand.u32 4294901760, %v1941_v6 }
  0x3f   :  { %v2096_v61 = vpack.c.bf16 %v2408_v54, %v2407_v5  ;;  %v2419_v5 = vand.u32 4294901760, %v1820_v46  ;;  %v2420_v54 = vand.u32 4294901760, %v1836_v13  ;;  %2424 = vst [vmem:[#allocation16_spill] sm:$0xff] %v2126_v0  ;;  %v2150_v0 = vpack.c.bf16 %v2435_v27, %v2434_v35 }
  0x40   :  { %2418 = vst [vmem:[#allocation14_spill] sm:$0xff] %v2114_v12  ;;  %2427 = vst [vmem:[#allocation17_spill] sm:$0xff] %v2132_v37  ;;  %v2138_v12 = vpack.c.bf16 %v2429_v16, %v2428_v17  ;;  %v2152_v59 = vpack.c.bf16 %v302_v47, %v295_v23  ;;  %v12_v14 = vlaneseq }
  0x41   :  { %2409 = vst [vmem:[#allocation11_spill] sm:$0xff] %v2096_v61  ;;  %v2120_v60 = vpack.c.bf16 %v2420_v54, %v2419_v5  ;;  %v2431_v5 = vand.u32 4294901760, %v1949_v48  ;;  %v2432_v54 = vand.u32 4294901760, %v1960_v1  ;;  %2436 = vst [vmem:[#allocation20_spill] sm:$0xff] %v2150_v0  ;;  %v2440_v0 = vmov 1.0  }
  0x42   :  { %2430 = vst [vmem:[#allocation18_spill] sm:$0xff] %v2138_v12  ;;  %2437 = vst [vmem:[#allocation21_spill] sm:$0xff] %v2152_v59  ;;  %v2154_v37 = vand.u32 127, %v12_v14 }
  0x43   :  { %2421 = vst [vmem:[#allocation15_spill] sm:$0xff] %v2120_v60  ;;  %v2144_v60 = vpack.c.bf16 %v2432_v54, %v2431_v5  ;;  %v1471_v5 = vmov 0.0   ;;  %v2383_v54 = vmov 1.0  }
  0x44   :  { %2438 = vst [vmem:[#allocation22_spill] sm:$0xff] %v2154_v37  ;;  %v2157_v17 = vadd.s32 128, %v2154_v37 }
  0x45   :  { %2433 = vst [vmem:[#allocation19_spill] sm:$0xff] %v2144_v60 }
  0x81   :  { %v2159_v16 = vpop.permute.xlu0 %18 }
  0x82   :  { %vm23_vm0 = vcmp.eq.s32.totalorder %v2159_v16, %v2154_v37  ;;  %vm24_vm1 = vcmp.eq.s32.totalorder %v2159_v16, %v2157_v17 }
  0x83   :  { %v1003_v23 = vsel %vm23_vm0, 1.0, %v1471_v5  ;;  %v1004_v47 = vsel %vm24_vm1, 1.0, %v1471_v5  ;;  %1007 = vmatprep.mubr.msk.f32.mxu1 %vm24_vm1, %v2383_v54 }
  0x84   :  { %v164_v35 = vsub.f32 %v1004_v47, %v1004_v47  ;;  %v2175_v27 = vsub.f32 %v1003_v23, %v1003_v23  ;;  %1008 = vmatmul.mubr.msk.f32.vlgmr.msra.gmra.mrb[0].mxu1 %vm23_vm0, %v2383_v54 }
  0x85   :  { %1346 = vmatpush3.bf16.msra.mxu1 %v1668_v4  ;;  %v2182_v14 = vpop.permute.xlu0 %21 }
  0x86   :  { %2439 = vst [vmem:[#allocation23_spill] sm:$0xff] %v2182_v14  ;;  %vm25_vm2 = vcmp.eq.s32.totalorder %v2182_v14, %v2154_v37  ;;  %vm26_vm3 = vcmp.eq.s32.totalorder %v2182_v14, %v2157_v17  ;;  %1348 = vmatprep.subr.bf16.mxu1 %v1695_v9  ;;  %v165_v47 = vand.u32 4294901760, %v164_v35  ;;  %v171_v23 = vand.u32 4294901760, %v2175_v27 }
  0x87   :  { %v1005_v59 = vsel %vm25_vm2, 1.0, %v1471_v5  ;;  %v1006_v54 = vsel %vm26_vm3, 1.0, %v1471_v5  ;;  %1009 = vmatprep.mubr.msk.f32.mxu1 %vm26_vm3, %v2440_v0  ;;  %v2441_v14 = vpack.c.bf16 %v1558_v21, %v1553_v20  ;;  %v2446_v20 = vpack.c.bf16 %v1661_v3, %v1648_v62  ;;  %v2447_v21 = vld [vmem:[#allocation7_spill] sm:$0xff] }
  0x88   :  { %v179_v60 = vsub.f32 %v1006_v54, %v1006_v54  ;;  %v185_v12 = vsub.f32 %v1005_v59, %v1005_v59  ;;  %1010 = vmatmul.mubr.msk.f32.gmra.mrb[2].mxu1 %vm25_vm2, %v2440_v0  ;;  %v166_v53 = vsub.f32 %v164_v35, %v165_v47  ;;  %v172_v7 = vsub.f32 %v2175_v27, %v171_v23 }
  0x89   :  { %1350 = vmatpush3.bf16.msra.mxu1 %v1757_v11  ;;  %679 = vmatprep.mubr.f32.mxu1 %v165_v47  ;;  %v2453_v62 = vpack.c.bf16 %v1836_v13, %v1820_v46  ;;  %v2454_v3 = vpack.c.bf16 %v1860_v38, %v1842_v52  ;;  %v2457_v38 = vpack.c.bf16 %v1960_v1, %v1949_v48  ;;  %v2472_v13 = vld [vmem:[#allocation19_spill] sm:$0xff]  ;;  %v2473_v52 = vld [vmem:[#allocation20_spill] sm:$0xff] }
  0x8a   :  { %1352 = vmatprep.subr.bf16.mxu1 %v1788_v2  ;;  %v167_v5 = vand.u32 4294901760, %v166_v53  ;;  %v173_v61 = vand.u32 4294901760, %v172_v7  ;;  %v180_v45 = vand.u32 4294901760, %v179_v60  ;;  %v186_v19 = vand.u32 4294901760, %v185_v12  ;;  %v2443_v7 = vld [vmem:[#allocation5_spill] sm:$0xff] }
  0x8b   :  { %v2442_v53 = vpack.c.bf16 %v1570_v25, %v1565_v24  ;;  %v2448_v24 = vpack.c.bf16 %v1688_v8, %v1675_v31  ;;  %v2449_v25 = vld [vmem:[#allocation8_spill] sm:$0xff]  ;;  %v2455_v31 = vpack.c.bf16 %v1885_v50, %v1880_v29  ;;  %v2456_v8 = vpack.c.bf16 %v1941_v6, %v1938_v57 }
  0x8c   :  { %168 = vmatprep.mubr.f32.mxu0 %v167_v5  ;;  %v181_v54 = vsub.f32 %v179_v60, %v180_v45  ;;  %v187_v59 = vsub.f32 %v185_v12, %v186_v19  ;;  %v2444_v5 = vpack.c.bf16 %v1583_v30, %v1575_v26  ;;  %v2451_v26 = vpack.c.bf16 %v1735_v55, %v1721_v43  ;;  %v2464_v43 = vld [vmem:[#allocation13_spill] sm:$0xff]  ;;  %v2465_v55 = vld [vmem:[#allocation14_spill] sm:$0xff] }
  0x8d   :  { %1354 = vmatpush3.bf16.msra.mxu1 %v1812_v58  ;;  %174 = vmatmul.mubr.f32.vlgmr.msra.gmra.mrb[0].mxu0 %v173_v61  ;;  %v2445_v61 = vld [vmem:[#allocation6_spill] sm:$0xff]  ;;  %v2452_v30 = vpack.c.bf16 %v1803_v15, %v1798_v41  ;;  %v2458_v29 = vpack.c.bf16 %v1988_v40, %v1983_v56  ;;  %v2468_v41 = vld [vmem:[#allocation17_spill] sm:$0xff] }
  0x8e   :  { %1314 = vmatpush3.bf16.msra.mxu0 %v2441_v14  ;;  %1356 = vmatprep.subr.bf16.mxu1 %v1848_v51  ;;  %v182_v37 = vand.u32 4294901760, %v181_v54  ;;  %v188_v47 = vand.u32 4294901760, %v187_v59  ;;  %v2469_v15 = vld [vmem:[#allocation18_spill] sm:$0xff] }
  0x8f   :  { %1316 = vmatprep.subr.bf16.mxu0 %v2442_v53 }
  0x90   :  { %183 = vmatprep.mubr.f32.mxu0 %v182_v37  ;;  %v2450_v37 = vpack.c.bf16 %v1710_v10, %v1705_v42  ;;  %v2462_v42 = vld [vmem:[#allocation11_spill] sm:$0xff]  ;;  %v2463_v10 = vld [vmem:[#allocation12_spill] sm:$0xff] }
  0x91   :  { %1358 = vmatpush3.bf16.msra.mxu1 %v2443_v7  ;;  %189 = vmatmul.mubr.f32.gmra.mrb[2].mxu0 %v188_v47 }
  0x92   :  { %1318 = vmatpush3.bf16.msra.mxu0 %v2444_v5  ;;  %563 = vmatprep.mubr.f32.mxu0 %v164_v35 }
  0x93   :  { %1360 = vmatprep.subr.bf16.mxu1 %v2445_v61  ;;  %1320 = vmatprep.subr.bf16.mxu0 %v2446_v20 }
  0x95   :  { %1362 = vmatpush3.bf16.msra.mxu1 %v2447_v21 }
  0x96   :  { %1322 = vmatpush3.bf16.msra.mxu0 %v2448_v24  ;;  %1364 = vmatprep.subr.bf16.mxu1 %v2449_v25 }
  0x97   :  { %1324 = vmatprep.subr.bf16.mxu0 %v2450_v37 }
  0x99   :  { %1366 = vmatpush3.bf16.msra.mxu1 %v2007_v34 }
  0x9a   :  { %1326 = vmatpush3.bf16.msra.mxu0 %v2451_v26  ;;  %1368 = vmatprep.subr.bf16.mxu1 %v2015_v36 }
  0x9b   :  { %1328 = vmatprep.subr.bf16.mxu0 %v2452_v30 }
  0x9d   :  { %1370 = vmatpush3.bf16.msra.mxu1 %v2020_v28 }
  0x9e   :  { %1330 = vmatpush3.bf16.msra.mxu0 %v2453_v62  ;;  %1372 = vmatprep.subr.bf16.mxu1 %v2022_v18 }
  0x9f   :  { %1332 = vmatprep.subr.bf16.mxu0 %v2454_v3 }
  0xa1   :  { %1374 = vmatpush3.bf16.msra.mxu1 %v2024_v33 }
  0xa2   :  { %1334 = vmatpush3.bf16.msra.mxu0 %v2455_v31  ;;  %1408 = vmatprep.subr.bf16.mxu1 %v1650_v63  ;;  %v2459_v63 = vpack.c.bf16 %v1998_v39, %v1996_v32 }
  0xa3   :  { %1336 = vmatprep.subr.bf16.mxu0 %v2456_v8 }
  0xa4   :  { %683 = vmatmul.mubr.f32.vlgmr.msra.gmra.mrb[4].mxu1 %v171_v23 }
  0xa5   :  { %690 = vmatprep.mubr.f32.mxu1 %v180_v45  ;;  %1410 = vmatpush3.bf16.msra.mxu1 %v1668_v4  ;;  %v2460_v4 = vld [vmem:[#allocation9_spill] sm:$0xff] }
  0xa6   :  { %1338 = vmatpush3.bf16.msra.mxu0 %v2457_v38  ;;  %1412 = vmatprep.subr.bf16.mxu1 %v1695_v9  ;;  %v2461_v9 = vld [vmem:[#allocation10_spill] sm:$0xff] }
  0xa7   :  { %1340 = vmatprep.subr.bf16.mxu0 %v2458_v29 }
  0xa8   :  { %694 = vmatmul.mubr.f32.gmra.mrb[6].mxu1 %v186_v19 }
  0xa9   :  { %1414 = vmatpush3.bf16.msra.mxu1 %v1757_v11  ;;  %1015 = vmatprep.mubr.msk.f32.mxu1 %vm24_vm1, %v2440_v0  ;;  %v2466_v11 = vld [vmem:[#allocation15_spill] sm:$0xff] }
  0xaa   :  { %1342 = vmatpush3.bf16.msra.mxu0 %v2459_v63  ;;  %1416 = vmatprep.subr.bf16.mxu1 %v1788_v2  ;;  %v2467_v2 = vld [vmem:[#allocation16_spill] sm:$0xff] }
  0xab   :  { %1376 = vmatprep.subr.bf16.mxu0 %v2066_v49 }
  0xad   :  { %566 = vmatmul.mubr.f32.vlgmr.msra.gmra.mrb[4].mxu0 %v2175_v27  ;;  %1418 = vmatpush3.bf16.msra.mxu1 %v1812_v58 }
  0xae   :  { %572 = vmatprep.mubr.f32.mxu0 %v179_v60  ;;  %1378 = vmatpush3.bf16.msra.mxu0 %v2072_v44 }
  0xaf   :  { %1420 = vmatprep.subr.bf16.mxu1 %v1848_v51  ;;  %1380 = vmatprep.subr.bf16.mxu0 %v2078_v22  ;;  %v2474_v51 = vld [vmem:[#allocation21_spill] sm:$0xff] }
  0xb1   :  { %575 = vmatmul.mubr.f32.gmra.mrb[6].mxu0 %v185_v12  ;;  %1422 = vmatpush3.bf16.msra.mxu1 %v2443_v7 }
  0xb2   :  { %1382 = vmatpush3.bf16.msra.mxu0 %v2460_v4  ;;  %1011 = vmatprep.mubr.msk.f32.mxu0 %vm24_vm1, %v2440_v0 }
  0xb3   :  { %1424 = vmatprep.subr.bf16.mxu1 %v2445_v61  ;;  %1384 = vmatprep.subr.bf16.mxu0 %v2461_v9 }
  0xb5   :  { %1426 = vmatpush3.bf16.msra.mxu1 %v2447_v21 }
  0xb6   :  { %1386 = vmatpush3.bf16.msra.mxu0 %v2462_v42  ;;  %1428 = vmatprep.subr.bf16.mxu1 %v2449_v25 }
  0xb7   :  { %1388 = vmatprep.subr.bf16.mxu0 %v2463_v10 }
  0xb9   :  { %1430 = vmatpush3.bf16.msra.mxu1 %v2007_v34 }
  0xba   :  { %1390 = vmatpush3.bf16.msra.mxu0 %v2464_v43  ;;  %1432 = vmatprep.subr.bf16.mxu1 %v2015_v36 }
  0xbb   :  { %1392 = vmatprep.subr.bf16.mxu0 %v2465_v55 }
  0xbd   :  { %1434 = vmatpush3.bf16.msra.mxu1 %v2020_v28 }
  0xbe   :  { %1394 = vmatpush3.bf16.msra.mxu0 %v2466_v11  ;;  %1436 = vmatprep.subr.bf16.mxu1 %v2022_v18 }
  0xbf   :  { %1396 = vmatprep.subr.bf16.mxu0 %v2467_v2 }
  0xc1   :  { %1438 = vmatpush3.bf16.msra.mxu1 %v2024_v33 }
  0xc2   :  { %1398 = vmatpush3.bf16.msra.mxu0 %v2468_v41 }
  0xc3   :  { %1400 = vmatprep.subr.bf16.mxu0 %v2469_v15 }
  0xc4   :  { %1016 = vmatmul.mubr.msk.f32.vlgmr.msra.gmra.mrb[8].mxu1 %vm23_vm0, %v2440_v0 }
  0xc5   :  { %1017 = vmatprep.mubr.msk.f32.mxu1 %vm26_vm3, %v2440_v0 }
  0xc6   :  { %1402 = vmatpush3.bf16.msra.mxu0 %v2472_v13 }
  0xc7   :  { %1404 = vmatprep.subr.bf16.mxu0 %v2473_v52 }
  0xc8   :  { %1018 = vmatmul.mubr.msk.f32.gmra.mrb[10].mxu1 %vm25_vm2, %v2440_v0 }
  0xca   :  { %1406 = vmatpush3.bf16.msra.mxu0 %v2474_v51 }
  0xcd   :  { %1012 = vmatmul.mubr.msk.f32.vlgmr.msra.gmra.mrb[8].mxu0 %vm23_vm0, %v2440_v0 }
  0xce   :  { %1013 = vmatprep.mubr.msk.f32.mxu0 %vm26_vm3, %v2440_v0 }
  0xd1   :  { %1014 = vmatmul.mubr.msk.f32.gmra.mrb[10].mxu0 %vm25_vm2, %v2440_v0 }
 0x157   :  { %v1089_v50 = vpop.f32.mrb[0].mxu1 }
 0x158   :  { %v1090_v48 = vpop.f32.mrb[1].mxu1 }
 0x159   :  { %v1091_v32 = vadd.f32 %v1090_v48, %v1089_v50 }
 0x15b   :  { %v1092_v57 = vpop.f32.mrb[2].mxu1 }
 0x15c   :  { %v1093_v6 = vpop.f32.mrb[3].mxu1 }
 0x15d   :  { %v1094_v1 = vadd.f32 %v1093_v6, %v1092_v57 }
 0x160   :  { %v1051_v39 = vpop.f32.mrb[0].mxu0 }
 0x161   :  { %v1052_v34 = vpop.f32.mrb[1].mxu0 }
 0x162   :  { %v1053_v56 = vadd.f32 %v1052_v34, %v1051_v39 }
 0x164   :  { %v423_v40 = vadd.f32 %v1091_v32, %v1053_v56  ;;  %v1054_v33 = vpop.f32.mrb[2].mxu0 }
 0x165   :  { %v1055_v18 = vpop.f32.mrb[3].mxu0 }
 0x166   :  { %v1056_v36 = vadd.f32 %v1055_v18, %v1054_v33 }
 0x168   :  { %v430_v28 = vadd.f32 %v1094_v1, %v1056_v36 }
 0x177   :  { %v1165_v60 = vpop.f32.mrb[4].mxu1 }
 0x178   :  { %v1166_v12 = vpop.f32.mrb[5].mxu1 }
 0x179   :  { %v1167_v45 = vadd.f32 %v1166_v12, %v1165_v60 }
 0x17b   :  { %v1168_v22 = vpop.f32.mrb[6].mxu1 }
 0x17c   :  { %v1169_v44 = vpop.f32.mrb[7].mxu1 }
 0x17d   :  { %v1170_v0 = vadd.f32 %v1169_v44, %v1168_v22 }
 0x180   :  { %v1127_v49 = vpop.f32.mrb[4].mxu0 }
 0x181   :  { %v1128_v19 = vpop.f32.mrb[5].mxu0 }
 0x182   :  { %v1129_v17 = vadd.f32 %v1128_v19, %v1127_v49 }
 0x184   :  { %v568_v16 = vadd.f32 %v1129_v17, %v423_v40  ;;  %v1130_v35 = vpop.f32.mrb[6].mxu0 }
 0x185   :  { %v1131_v27 = vpop.f32.mrb[7].mxu0 }
 0x186   :  { %v1132_v14 = vadd.f32 %v1131_v27, %v1130_v35  ;;  %v685_v23 = vadd.f32 %v1167_v45, %v568_v16 }
 0x188   :  { %v577_v54 = vadd.f32 %v1132_v14, %v430_v28 }
 0x18a   :  { %v696_v59 = vadd.f32 %v1170_v0, %v577_v54 }
 0x197   :  { %v1241_v47 = vpop.f32.mrb[8].mxu1 }
 0x198   :  { %v1242_v53 = vpop.f32.mrb[9].mxu1 }
 0x199   :  { %v1243_v7 = vadd.f32 %v1242_v53, %v1241_v47 }
 0x19b   :  { %v1244_v5 = vpop.f32.mrb[10].mxu1 }
 0x19c   :  { %v1245_v61 = vpop.f32.mrb[11].mxu1 }
 0x19d   :  { %v1246_v20 = vadd.f32 %v1245_v61, %v1244_v5 }
 0x1a0   :  { %v1203_v21 = vpop.f32.mrb[8].mxu0 }
 0x1a1   :  { %v1204_v24 = vpop.f32.mrb[9].mxu0 }
 0x1a2   :  { %v1205_v25 = vadd.f32 %v1204_v24, %v1203_v21 }
 0x1a4   :  { %v864_v37 = vadd.f32 %v1205_v25, %v685_v23  ;;  %v1206_v26 = vpop.f32.mrb[10].mxu0 }
 0x1a5   :  { %v1207_v30 = vpop.f32.mrb[11].mxu0 }
 0x1a6   :  { %v975_v62 = vadd.f32 %v1243_v7, %v864_v37  ;;  %v1208_v3 = vadd.f32 %v1207_v30, %v1206_v26 }
 0x1a8   :  { %985 = vst [vmem:[#allocation2] sm:$0xff] %v975_v62  ;;  %v871_v31 = vadd.f32 %v1208_v3, %v696_v59 }
 0x1aa   :  { %v982_v8 = vadd.f32 %v1246_v20, %v871_v31 }
 0x1ac   :  { %986 = vst [vmem:[#allocation2 + $0x8] sm:$0xff] %v982_v8 }
 0x1ad   :  { %1457 = shalt.err (!%p1454_p4)
}
 0x1ae   :  { %s1458_s23 = scalar_lea.hbm %s2342_s2, 256 }
 0x1af   :  { %p1459_p5 = scmp.ne.s32.totalorder %s2342_s2, %s1458_s23  ;;  %p1462_p6 = scmp.lt.u32.totalorder %s1458_s23, %s2342_s2 }
 0x1b1   :  { %p1464_p7 = pnand %p1462_p6, %p1459_p5 }
 0x1b3   :  { %1467 = shalt.err (!%p1464_p7)
}
 0x1b4   :  { %s1474_s28 = smov 128   ;;  %s1475_s0 = smov 8  }
 0x1b5   :  { %998 = dma.vmem_to_hbm [thread:$0]  %s993_s19, 256, %s2342_s2, [#allocation3], %s1474_s28, %s1474_s28, %s1475_s0  }
 0x1b6   :  { %1468 = dma.done.wait [#allocation3], 256  }
 0x1b7   :  { %1469 = vsyncadd [#allocation3], 4294967040 }
 0x1b8   :  { %1002 = vsyncpa [#allocation3], 1 }

</bundles_post_ra>
